<compile_context>
chip_gen: v7x
topology: tpu7x:2x2x1
jax: 0.10.0
libtpu: 0.0.40
codegen_flags: <defaults>
</compile_context>

<pallas_src>
import functools

import jax
import jax.numpy as jnp
from jax import lax
from jax.experimental import pallas as pl
from jax.experimental.pallas import tpu as pltpu


def _im2col_into(src, fpad_ref, patches_ref, *, C, H, W, P):
    """Write the 9 shifted (zero-padded) 3x3 taps of `src` into patches_ref.

    src:         (C, H*W) f32, lane-dense (pixels on the lane axis).
    fpad_ref:    (C, H*W + 2*P) VMEM scratch, flat zero-padding of P >= W+1 per side.
    patches_ref: (9*C, H*W) VMEM scratch; row block t = kh*3 + kw holds tap (kh, kw).
    """
    HW = H * W
    fpad_ref[...] = jnp.zeros_like(fpad_ref)       # pad regions must be zero
    fpad_ref[:, P:P + HW] = src                    # interior = the image

    # column index of every output pixel; used to kill row-wrap reads.
    ww = lax.broadcasted_iota(jnp.int32, (1, HW), 1) % W
    col_ok = {-1: ww >= 1, 0: None, 1: ww < (W - 1)}

    for kh in range(3):
        dh = kh - 1
        for kw in range(3):
            dw = kw - 1
            t = kh * 3 + kw
            d = dh * W + dw
            tap = fpad_ref[:, P + d:P + d + HW]    # (C, HW); vertical OOB reads zeros
            m = col_ok[dw]
            if m is not None:                      # horizontal OOB -> mask to zero
                tap = jnp.where(m, tap, 0.0)
            patches_ref[t * C:(t + 1) * C, :] = tap


def _fused_feature_kernel(x_ref, w1_ref, b1_ref, w2_ref, b2_ref,
                          r1_ref, out_ref,
                          fpad1, patches1, fpad2, patches2, *, H, W, P):
    """conv1+ReLU -> conv2+ReLU for one batch element, intermediates in VMEM.

    x_ref:  (1, Cin, H*W)           w1_ref: (C1, 9*Cin)   b1_ref: (C1, 1)
                                    w2_ref: (C2, 9*C1)    b2_ref: (C2, 1)
    r1_ref: (1, C1, H*W)  extracted "relu1" output (lane-dense)
    out_ref:(1, C2, H*W)  final output (lane-dense)
    """
    Cin = x_ref.shape[1]
    C1 = w1_ref.shape[0]

    # ---- conv1 + bias + ReLU (ReLU fused into the conv epilogue) ----
    _im2col_into(x_ref[0].astype(jnp.float32), fpad1, patches1, C=Cin, H=H, W=W, P=P)
    a1 = jnp.dot(w1_ref[...], patches1[...], preferred_element_type=jnp.float32)
    a1 = jnp.maximum(a1 + b1_ref[...], 0.0)        # (C1, HW)
    r1_ref[0] = a1.astype(r1_ref.dtype)

    # ---- conv2 + bias + ReLU, consuming the VMEM-resident intermediate ----
    _im2col_into(a1, fpad2, patches2, C=C1, H=H, W=W, P=P)
    a2 = jnp.dot(w2_ref[...], patches2[...], preferred_element_type=jnp.float32)
    a2 = jnp.maximum(a2 + b2_ref[...], 0.0)        # (C2, HW)
    out_ref[0] = a2.astype(out_ref.dtype)


def feature_extractor_forward(x_nchw, params):
    """Pallas port of FeatureExtractor(submodule, ["relu1"]).forward(x).

    Returns [relu1_output, final_output], both NCHW, matching the PyTorch module.
    The whole submodule chain is fused into a single pallas_call; the extracted
    intermediate is a second kernel output.
    """
    w1_oihw, b1, w2_oihw, b2 = params
    N, Cin, H, W = x_nchw.shape
    C1 = w1_oihw.shape[0]
    C2 = w2_oihw.shape[0]
    HW = H * W
    P = pl.cdiv(W + 1, 128) * 128          # lane-aligned flat padding, >= W+1
    FP = HW + 2 * P

    # Lane-dense views: contiguous reshapes only (no transposes), NCHW order preserved.
    x_flat = x_nchw.reshape(N, Cin, HW)

    # Weights as (Cout, 9*Cin); column p = (kh*3 + kw)*Cin + i matches im2col rows.
    w1_2d = jnp.transpose(w1_oihw, (0, 2, 3, 1)).reshape(C1, 9 * Cin)
    w2_2d = jnp.transpose(w2_oihw, (0, 2, 3, 1)).reshape(C2, 9 * C1)
    b1_2d = b1.reshape(C1, 1)
    b2_2d = b2.reshape(C2, 1)

    kernel = functools.partial(_fused_feature_kernel, H=H, W=W, P=P)
    r1_flat, out_flat = pl.pallas_call(
        kernel,
        out_shape=(
            jax.ShapeDtypeStruct((N, C1, HW), x_nchw.dtype),
            jax.ShapeDtypeStruct((N, C2, HW), x_nchw.dtype),
        ),
        grid=(N,),
        in_specs=[
            pl.BlockSpec((1, Cin, HW), lambda n: (n, 0, 0)),
            pl.BlockSpec((C1, 9 * Cin), lambda n: (0, 0)),
            pl.BlockSpec((C1, 1), lambda n: (0, 0)),
            pl.BlockSpec((C2, 9 * C1), lambda n: (0, 0)),
            pl.BlockSpec((C2, 1), lambda n: (0, 0)),
        ],
        out_specs=(
            pl.BlockSpec((1, C1, HW), lambda n: (n, 0, 0)),
            pl.BlockSpec((1, C2, HW), lambda n: (n, 0, 0)),
        ),
        scratch_shapes=[
            pltpu.VMEM((Cin, FP), jnp.float32),      # flat-padded input plane
            pltpu.VMEM((9 * Cin, HW), jnp.float32),  # im2col patches for conv1
            pltpu.VMEM((C1, FP), jnp.float32),       # flat-padded relu1 plane
            pltpu.VMEM((9 * C1, HW), jnp.float32),   # im2col patches for conv2
        ],
        compiler_params=pltpu.CompilerParams(
            dimension_semantics=("parallel",)),      # v7x: N=2 over 2 TensorCores
    )(x_flat, w1_2d, b1_2d, w2_2d, b2_2d)

    # Free contiguous reshapes back to NCHW (same memory order).
    return [r1_flat.reshape(N, C1, H, W), out_flat.reshape(N, C2, H, W)]


if __name__ == "__main__":
    key = jax.random.PRNGKey(0)
    k_x, k_w1, k_b1, k_w2, k_b2 = jax.random.split(key, 5)

    N, Cin, H, W = 2, 4, 16, 16
    C1, C2 = 8, 8

    x_nchw = jax.random.normal(k_x, (N, Cin, H, W), jnp.float32)

    # Deterministic synthetic parameters (PyTorch Conv2d weight layout is OIHW).
    w1_oihw = 0.1 * jax.random.normal(k_w1, (C1, Cin, 3, 3), jnp.float32)
    b1 = 0.1 * jax.random.normal(k_b1, (C1,), jnp.float32)
    w2_oihw = 0.1 * jax.random.normal(k_w2, (C2, C1, 3, 3), jnp.float32)
    b2 = 0.1 * jax.random.normal(k_b2, (C2,), jnp.float32)

    params = (w1_oihw, b1, w2_oihw, b2)
    forward = jax.jit(feature_extractor_forward)
    outs = forward(x_nchw, params)
    outs = [jax.block_until_ready(o) for o in outs]

    # Pure-JAX reference (mimics the PyTorch submodule) for a correctness check.
    def ref_conv(t, w_oihw, b):
        y = lax.conv_general_dilated(
            t, w_oihw, (1, 1), "SAME",
            dimension_numbers=("NCHW", "OIHW", "NCHW"))
        return y + b[None, :, None, None]

    r = ref_conv(x_nchw, w1_oihw, b1)
    ref_relu1 = jnp.maximum(r, 0.0)
    r = ref_conv(ref_relu1, w2_oihw, b2)
    ref_final = jnp.maximum(r, 0.0)
    refs = [ref_relu1, ref_final]

    assert len(outs) == len(refs)
    for got, want in zip(outs, refs):
        assert got.shape == want.shape and got.dtype == want.dtype
        assert jnp.allclose(got, want, rtol=1e-4, atol=1e-4)

    print("KERNEL_OK")
</pallas_src>

<mosaic_0001>
module attributes {stable_mosaic.version = 11 : i64} {
  func.func @_fused_feature_kernel(%arg0: i32, %arg1: memref<1x4x256xf32, #tpu.memory_space<vmem>>, %arg2: memref<8x36xf32, #tpu.memory_space<vmem>>, %arg3: memref<8x1xf32, #tpu.memory_space<vmem>>, %arg4: memref<8x72xf32, #tpu.memory_space<vmem>>, %arg5: memref<8x1xf32, #tpu.memory_space<vmem>>, %arg6: memref<1x8x256xf32, #tpu.memory_space<vmem>>, %arg7: memref<1x8x256xf32, #tpu.memory_space<vmem>>, %arg8: memref<4x512xf32, #tpu.memory_space<vmem>>, %arg9: memref<36x256xf32, #tpu.memory_space<vmem>>, %arg10: memref<8x512xf32, #tpu.memory_space<vmem>>, %arg11: memref<72x256xf32, #tpu.memory_space<vmem>>) attributes {dimension_semantics = [#tpu.dimension_semantics<parallel>], iteration_bounds = array<i64: 2>, scalar_prefetch = 0 : i64, scratch_operands = 4 : i64, tpu.core_type = #tpu.core_type<tc>, window_params = [{transform_indices = @transform_0, window_bounds = array<i64: 1, 4, 256>}, {pipeline_mode = #tpu.pipeline_mode<synchronous>, transform_indices = @transform_1, window_bounds = array<i64: 8, 36>}, {pipeline_mode = #tpu.pipeline_mode<synchronous>, transform_indices = @transform_2, window_bounds = array<i64: 8, 1>}, {pipeline_mode = #tpu.pipeline_mode<synchronous>, transform_indices = @transform_3, window_bounds = array<i64: 8, 72>}, {pipeline_mode = #tpu.pipeline_mode<synchronous>, transform_indices = @transform_4, window_bounds = array<i64: 8, 1>}, {transform_indices = @transform_5, window_bounds = array<i64: 1, 8, 256>}, {transform_indices = @transform_6, window_bounds = array<i64: 1, 8, 256>}]} {
    %c0 = arith.constant 0 : index
    %c0_0 = arith.constant 0 : index
    %c0_1 = arith.constant 0 : index
    %0 = vector.load %arg1[%c0, %c0_0, %c0_1] : memref<1x4x256xf32, #tpu.memory_space<vmem>>, vector<1x4x256xf32>
    %1 = vector.shape_cast %0 : vector<1x4x256xf32> to vector<4x256xf32>
    %cst = arith.constant 0.000000e+00 : f32
    %2 = vector.broadcast %cst : f32 to vector<4x512xf32>
    %c0_2 = arith.constant 0 : index
    %c0_3 = arith.constant 0 : index
    %3 = vector.load %arg8[%c0_2, %c0_3] : memref<4x512xf32, #tpu.memory_space<vmem>>, vector<4x512xf32>
    tpu.vector_store %arg8[%c0_2, %c0_3], %2 {strides = array<i32>} : memref<4x512xf32, #tpu.memory_space<vmem>>, vector<4x512xf32>,
    %c0_4 = arith.constant 0 : index
    %c128 = arith.constant 128 : index
    %4 = vector.load %arg8[%c0_4, %c128] : memref<4x512xf32, #tpu.memory_space<vmem>>, vector<4x256xf32>
    tpu.vector_store %arg8[%c0_4, %c128], %1 {strides = array<i32>} : memref<4x512xf32, #tpu.memory_space<vmem>>, vector<4x256xf32>,
    %5 = tpu.iota {dimensions = array<i32: 1>} : vector<1x256xi32>
    %c16_i32 = arith.constant 16 : i32
    %c0_i32 = arith.constant 0 : i32
    %6 = arith.cmpi eq, %c16_i32, %c0_i32 : i32
    %c1_i32 = arith.constant 1 : i32
    %7 = arith.select %6, %c1_i32, %c16_i32 : i32
    %8 = vector.broadcast %7 : i32 to vector<1x256xi32>
    %9 = arith.remsi %5, %8 : vector<1x256xi32>
    %c0_i32_5 = arith.constant 0 : i32
    %10 = vector.broadcast %c0_i32_5 : i32 to vector<1x256xi32>
    %11 = arith.cmpi ne, %9, %10 : vector<1x256xi32>
    %c0_i32_6 = arith.constant 0 : i32
    %12 = vector.broadcast %c0_i32_6 : i32 to vector<1x256xi32>
    %13 = arith.cmpi slt, %9, %12 : vector<1x256xi32>
    %c0_i32_7 = arith.constant 0 : i32
    %14 = arith.cmpi slt, %7, %c0_i32_7 : i32
    %15 = vector.broadcast %14 : i1 to vector<1x256xi1>
    %16 = vector.broadcast %15 : vector<1x256xi1> to vector<1x256xi1>
    %17 = arith.xori %13, %16 : vector<1x256xi1>
    %18 = arith.andi %17, %11 : vector<1x256xi1>
    %19 = vector.broadcast %7 : i32 to vector<1x256xi32>
    %20 = arith.addi %9, %19 : vector<1x256xi32>
    %21 = arith.select %18, %20, %9 : vector<1x256xi1>, vector<1x256xi32>
    %c1_i32_8 = arith.constant 1 : i32
    %22 = vector.broadcast %c1_i32_8 : i32 to vector<1x256xi32>
    %23 = arith.cmpi sge, %21, %22 : vector<1x256xi32>
    %c15_i32 = arith.constant 15 : i32
    %24 = vector.broadcast %c15_i32 : i32 to vector<1x256xi32>
    %25 = arith.cmpi slt, %21, %24 : vector<1x256xi32>
    %c0_9 = arith.constant 0 : index
    %c111 = arith.constant 111 : index
    %26 = vector.load %arg8[%c0_9, %c111] : memref<4x512xf32, #tpu.memory_space<vmem>>, vector<4x256xf32>
    %cst_10 = arith.constant 0.000000e+00 : f32
    %27 = vector.shape_cast %23 : vector<1x256xi1> to vector<1x256xi1>
    %28 = vector.broadcast %27 : vector<1x256xi1> to vector<4x256xi1>
    %29 = vector.broadcast %cst_10 : f32 to vector<4x256xf32>
    %30 = arith.select %28, %26, %29 : vector<4x256xi1>, vector<4x256xf32>
    %c0_11 = arith.constant 0 : index
    %c0_12 = arith.constant 0 : index
    %31 = vector.load %arg9[%c0_11, %c0_12] : memref<36x256xf32, #tpu.memory_space<vmem>>, vector<4x256xf32>
    tpu.vector_store %arg9[%c0_11, %c0_12], %30 {strides = array<i32>} : memref<36x256xf32, #tpu.memory_space<vmem>>, vector<4x256xf32>,
    %c0_13 = arith.constant 0 : index
    %c112 = arith.constant 112 : index
    %32 = vector.load %arg8[%c0_13, %c112] : memref<4x512xf32, #tpu.memory_space<vmem>>, vector<4x256xf32>
    %c4 = arith.constant 4 : index
    %c0_14 = arith.constant 0 : index
    %33 = vector.load %arg9[%c4, %c0_14] : memref<36x256xf32, #tpu.memory_space<vmem>>, vector<4x256xf32>
    tpu.vector_store %arg9[%c4, %c0_14], %32 {strides = array<i32>} : memref<36x256xf32, #tpu.memory_space<vmem>>, vector<4x256xf32>,
    %c0_15 = arith.constant 0 : index
    %c113 = arith.constant 113 : index
    %34 = vector.load %arg8[%c0_15, %c113] : memref<4x512xf32, #tpu.memory_space<vmem>>, vector<4x256xf32>
    %cst_16 = arith.constant 0.000000e+00 : f32
    %35 = vector.shape_cast %25 : vector<1x256xi1> to vector<1x256xi1>
    %36 = vector.broadcast %35 : vector<1x256xi1> to vector<4x256xi1>
    %37 = vector.broadcast %cst_16 : f32 to vector<4x256xf32>
    %38 = arith.select %36, %34, %37 : vector<4x256xi1>, vector<4x256xf32>
    %c8 = arith.constant 8 : index
    %c0_17 = arith.constant 0 : index
    %39 = vector.load %arg9[%c8, %c0_17] : memref<36x256xf32, #tpu.memory_space<vmem>>, vector<4x256xf32>
    tpu.vector_store %arg9[%c8, %c0_17], %38 {strides = array<i32>} : memref<36x256xf32, #tpu.memory_space<vmem>>, vector<4x256xf32>,
    %c0_18 = arith.constant 0 : index
    %c127 = arith.constant 127 : index
    %40 = vector.load %arg8[%c0_18, %c127] : memref<4x512xf32, #tpu.memory_space<vmem>>, vector<4x256xf32>
    %cst_19 = arith.constant 0.000000e+00 : f32
    %41 = vector.shape_cast %23 : vector<1x256xi1> to vector<1x256xi1>
    %42 = vector.broadcast %41 : vector<1x256xi1> to vector<4x256xi1>
    %43 = vector.broadcast %cst_19 : f32 to vector<4x256xf32>
    %44 = arith.select %42, %40, %43 : vector<4x256xi1>, vector<4x256xf32>
    %c12 = arith.constant 12 : index
    %c0_20 = arith.constant 0 : index
    %45 = vector.load %arg9[%c12, %c0_20] : memref<36x256xf32, #tpu.memory_space<vmem>>, vector<4x256xf32>
    tpu.vector_store %arg9[%c12, %c0_20], %44 {strides = array<i32>} : memref<36x256xf32, #tpu.memory_space<vmem>>, vector<4x256xf32>,
    %c0_21 = arith.constant 0 : index
    %c128_22 = arith.constant 128 : index
    %46 = vector.load %arg8[%c0_21, %c128_22] : memref<4x512xf32, #tpu.memory_space<vmem>>, vector<4x256xf32>
    %c16 = arith.constant 16 : index
    %c0_23 = arith.constant 0 : index
    %47 = vector.load %arg9[%c16, %c0_23] : memref<36x256xf32, #tpu.memory_space<vmem>>, vector<4x256xf32>
    tpu.vector_store %arg9[%c16, %c0_23], %46 {strides = array<i32>} : memref<36x256xf32, #tpu.memory_space<vmem>>, vector<4x256xf32>,
    %c0_24 = arith.constant 0 : index
    %c129 = arith.constant 129 : index
    %48 = vector.load %arg8[%c0_24, %c129] : memref<4x512xf32, #tpu.memory_space<vmem>>, vector<4x256xf32>
    %cst_25 = arith.constant 0.000000e+00 : f32
    %49 = vector.shape_cast %25 : vector<1x256xi1> to vector<1x256xi1>
    %50 = vector.broadcast %49 : vector<1x256xi1> to vector<4x256xi1>
    %51 = vector.broadcast %cst_25 : f32 to vector<4x256xf32>
    %52 = arith.select %50, %48, %51 : vector<4x256xi1>, vector<4x256xf32>
    %c20 = arith.constant 20 : index
    %c0_26 = arith.constant 0 : index
    %53 = vector.load %arg9[%c20, %c0_26] : memref<36x256xf32, #tpu.memory_space<vmem>>, vector<4x256xf32>
    tpu.vector_store %arg9[%c20, %c0_26], %52 {strides = array<i32>} : memref<36x256xf32, #tpu.memory_space<vmem>>, vector<4x256xf32>,
    %c0_27 = arith.constant 0 : index
    %c143 = arith.constant 143 : index
    %54 = vector.load %arg8[%c0_27, %c143] : memref<4x512xf32, #tpu.memory_space<vmem>>, vector<4x256xf32>
    %cst_28 = arith.constant 0.000000e+00 : f32
    %55 = vector.shape_cast %23 : vector<1x256xi1> to vector<1x256xi1>
    %56 = vector.broadcast %55 : vector<1x256xi1> to vector<4x256xi1>
    %57 = vector.broadcast %cst_28 : f32 to vector<4x256xf32>
    %58 = arith.select %56, %54, %57 : vector<4x256xi1>, vector<4x256xf32>
    %c24 = arith.constant 24 : index
    %c0_29 = arith.constant 0 : index
    %59 = vector.load %arg9[%c24, %c0_29] : memref<36x256xf32, #tpu.memory_space<vmem>>, vector<4x256xf32>
    tpu.vector_store %arg9[%c24, %c0_29], %58 {strides = array<i32>} : memref<36x256xf32, #tpu.memory_space<vmem>>, vector<4x256xf32>,
    %c0_30 = arith.constant 0 : index
    %c144 = arith.constant 144 : index
    %60 = vector.load %arg8[%c0_30, %c144] : memref<4x512xf32, #tpu.memory_space<vmem>>, vector<4x256xf32>
    %c28 = arith.constant 28 : index
    %c0_31 = arith.constant 0 : index
    %61 = vector.load %arg9[%c28, %c0_31] : memref<36x256xf32, #tpu.memory_space<vmem>>, vector<4x256xf32>
    tpu.vector_store %arg9[%c28, %c0_31], %60 {strides = array<i32>} : memref<36x256xf32, #tpu.memory_space<vmem>>, vector<4x256xf32>,
    %c0_32 = arith.constant 0 : index
    %c145 = arith.constant 145 : index
    %62 = vector.load %arg8[%c0_32, %c145] : memref<4x512xf32, #tpu.memory_space<vmem>>, vector<4x256xf32>
    %cst_33 = arith.constant 0.000000e+00 : f32
    %63 = vector.shape_cast %25 : vector<1x256xi1> to vector<1x256xi1>
    %64 = vector.broadcast %63 : vector<1x256xi1> to vector<4x256xi1>
    %65 = vector.broadcast %cst_33 : f32 to vector<4x256xf32>
    %66 = arith.select %64, %62, %65 : vector<4x256xi1>, vector<4x256xf32>
    %c32 = arith.constant 32 : index
    %c0_34 = arith.constant 0 : index
    %67 = vector.load %arg9[%c32, %c0_34] : memref<36x256xf32, #tpu.memory_space<vmem>>, vector<4x256xf32>
    tpu.vector_store %arg9[%c32, %c0_34], %66 {strides = array<i32>} : memref<36x256xf32, #tpu.memory_space<vmem>>, vector<4x256xf32>,
    %c0_35 = arith.constant 0 : index
    %c0_36 = arith.constant 0 : index
    %68 = vector.load %arg2[%c0_35, %c0_36] : memref<8x36xf32, #tpu.memory_space<vmem>>, vector<8x36xf32>
    %c0_37 = arith.constant 0 : index
    %c0_38 = arith.constant 0 : index
    %69 = vector.load %arg9[%c0_37, %c0_38] : memref<36x256xf32, #tpu.memory_space<vmem>>, vector<36x256xf32>
    %cst_39 = arith.constant dense<0.000000e+00> : vector<8x256xf32>
    %70 = tpu.matmul %68, %69, %cst_39 {dimension_numbers = #tpu.dot_dimension_numbers<[1], [0], [0], [1], [0, 0, 1, 1], [], []>} : vector<8x36xf32>, vector<36x256xf32>, vector<8x256xf32> -> vector<8x256xf32>
    %c0_40 = arith.constant 0 : index
    %c0_41 = arith.constant 0 : index
    %71 = vector.load %arg3[%c0_40, %c0_41] : memref<8x1xf32, #tpu.memory_space<vmem>>, vector<8x1xf32>
    %72 = vector.broadcast %71 : vector<8x1xf32> to vector<8x256xf32>
    %73 = arith.addf %70, %72 : vector<8x256xf32>
    %cst_42 = arith.constant 0.000000e+00 : f32
    %74 = vector.broadcast %cst_42 : f32 to vector<8x256xf32>
    %75 = arith.maximumf %73, %74 : vector<8x256xf32>
    %c0_43 = arith.constant 0 : index
    %c0_44 = arith.constant 0 : index
    %c0_45 = arith.constant 0 : index
    %76 = vector.load %arg6[%c0_43, %c0_44, %c0_45] : memref<1x8x256xf32, #tpu.memory_space<vmem>>, vector<1x8x256xf32>
    %77 = vector.shape_cast %76 : vector<1x8x256xf32> to vector<8x256xf32>
    %78 = vector.shape_cast %75 : vector<8x256xf32> to vector<1x8x256xf32>
    tpu.vector_store %arg6[%c0_43, %c0_44, %c0_45], %78 {strides = array<i32>} : memref<1x8x256xf32, #tpu.memory_space<vmem>>, vector<1x8x256xf32>,
    %cst_46 = arith.constant 0.000000e+00 : f32
    %79 = vector.broadcast %cst_46 : f32 to vector<8x512xf32>
    %c0_47 = arith.constant 0 : index
    %c0_48 = arith.constant 0 : index
    %80 = vector.load %arg10[%c0_47, %c0_48] : memref<8x512xf32, #tpu.memory_space<vmem>>, vector<8x512xf32>
    tpu.vector_store %arg10[%c0_47, %c0_48], %79 {strides = array<i32>} : memref<8x512xf32, #tpu.memory_space<vmem>>, vector<8x512xf32>,
    %c0_49 = arith.constant 0 : index
    %c128_50 = arith.constant 128 : index
    %81 = vector.load %arg10[%c0_49, %c128_50] : memref<8x512xf32, #tpu.memory_space<vmem>>, vector<8x256xf32>
    tpu.vector_store %arg10[%c0_49, %c128_50], %75 {strides = array<i32>} : memref<8x512xf32, #tpu.memory_space<vmem>>, vector<8x256xf32>,
    %82 = tpu.iota {dimensions = array<i32: 1>} : vector<1x256xi32>
    %c16_i32_51 = arith.constant 16 : i32
    %c0_i32_52 = arith.constant 0 : i32
    %83 = arith.cmpi eq, %c16_i32_51, %c0_i32_52 : i32
    %c1_i32_53 = arith.constant 1 : i32
    %84 = arith.select %83, %c1_i32_53, %c16_i32_51 : i32
    %85 = vector.broadcast %84 : i32 to vector<1x256xi32>
    %86 = arith.remsi %82, %85 : vector<1x256xi32>
    %c0_i32_54 = arith.constant 0 : i32
    %87 = vector.broadcast %c0_i32_54 : i32 to vector<1x256xi32>
    %88 = arith.cmpi ne, %86, %87 : vector<1x256xi32>
    %c0_i32_55 = arith.constant 0 : i32
    %89 = vector.broadcast %c0_i32_55 : i32 to vector<1x256xi32>
    %90 = arith.cmpi slt, %86, %89 : vector<1x256xi32>
    %c0_i32_56 = arith.constant 0 : i32
    %91 = arith.cmpi slt, %84, %c0_i32_56 : i32
    %92 = vector.broadcast %91 : i1 to vector<1x256xi1>
    %93 = vector.broadcast %92 : vector<1x256xi1> to vector<1x256xi1>
    %94 = arith.xori %90, %93 : vector<1x256xi1>
    %95 = arith.andi %94, %88 : vector<1x256xi1>
    %96 = vector.broadcast %84 : i32 to vector<1x256xi32>
    %97 = arith.addi %86, %96 : vector<1x256xi32>
    %98 = arith.select %95, %97, %86 : vector<1x256xi1>, vector<1x256xi32>
    %c1_i32_57 = arith.constant 1 : i32
    %99 = vector.broadcast %c1_i32_57 : i32 to vector<1x256xi32>
    %100 = arith.cmpi sge, %98, %99 : vector<1x256xi32>
    %c15_i32_58 = arith.constant 15 : i32
    %101 = vector.broadcast %c15_i32_58 : i32 to vector<1x256xi32>
    %102 = arith.cmpi slt, %98, %101 : vector<1x256xi32>
    %c0_59 = arith.constant 0 : index
    %c111_60 = arith.constant 111 : index
    %103 = vector.load %arg10[%c0_59, %c111_60] : memref<8x512xf32, #tpu.memory_space<vmem>>, vector<8x256xf32>
    %cst_61 = arith.constant 0.000000e+00 : f32
    %104 = vector.shape_cast %100 : vector<1x256xi1> to vector<1x256xi1>
    %105 = vector.broadcast %104 : vector<1x256xi1> to vector<8x256xi1>
    %106 = vector.broadcast %cst_61 : f32 to vector<8x256xf32>
    %107 = arith.select %105, %103, %106 : vector<8x256xi1>, vector<8x256xf32>
    %c0_62 = arith.constant 0 : index
    %c0_63 = arith.constant 0 : index
    %108 = vector.load %arg11[%c0_62, %c0_63] : memref<72x256xf32, #tpu.memory_space<vmem>>, vector<8x256xf32>
    tpu.vector_store %arg11[%c0_62, %c0_63], %107 {strides = array<i32>} : memref<72x256xf32, #tpu.memory_space<vmem>>, vector<8x256xf32>,
    %c0_64 = arith.constant 0 : index
    %c112_65 = arith.constant 112 : index
    %109 = vector.load %arg10[%c0_64, %c112_65] : memref<8x512xf32, #tpu.memory_space<vmem>>, vector<8x256xf32>
    %c8_66 = arith.constant 8 : index
    %c0_67 = arith.constant 0 : index
    %110 = vector.load %arg11[%c8_66, %c0_67] : memref<72x256xf32, #tpu.memory_space<vmem>>, vector<8x256xf32>
    tpu.vector_store %arg11[%c8_66, %c0_67], %109 {strides = array<i32>} : memref<72x256xf32, #tpu.memory_space<vmem>>, vector<8x256xf32>,
    %c0_68 = arith.constant 0 : index
    %c113_69 = arith.constant 113 : index
    %111 = vector.load %arg10[%c0_68, %c113_69] : memref<8x512xf32, #tpu.memory_space<vmem>>, vector<8x256xf32>
    %cst_70 = arith.constant 0.000000e+00 : f32
    %112 = vector.shape_cast %102 : vector<1x256xi1> to vector<1x256xi1>
    %113 = vector.broadcast %112 : vector<1x256xi1> to vector<8x256xi1>
    %114 = vector.broadcast %cst_70 : f32 to vector<8x256xf32>
    %115 = arith.select %113, %111, %114 : vector<8x256xi1>, vector<8x256xf32>
    %c16_71 = arith.constant 16 : index
    %c0_72 = arith.constant 0 : index
    %116 = vector.load %arg11[%c16_71, %c0_72] : memref<72x256xf32, #tpu.memory_space<vmem>>, vector<8x256xf32>
    tpu.vector_store %arg11[%c16_71, %c0_72], %115 {strides = array<i32>} : memref<72x256xf32, #tpu.memory_space<vmem>>, vector<8x256xf32>,
    %c0_73 = arith.constant 0 : index
    %c127_74 = arith.constant 127 : index
    %117 = vector.load %arg10[%c0_73, %c127_74] : memref<8x512xf32, #tpu.memory_space<vmem>>, vector<8x256xf32>
    %cst_75 = arith.constant 0.000000e+00 : f32
    %118 = vector.shape_cast %100 : vector<1x256xi1> to vector<1x256xi1>
    %119 = vector.broadcast %118 : vector<1x256xi1> to vector<8x256xi1>
    %120 = vector.broadcast %cst_75 : f32 to vector<8x256xf32>
    %121 = arith.select %119, %117, %120 : vector<8x256xi1>, vector<8x256xf32>
    %c24_76 = arith.constant 24 : index
    %c0_77 = arith.constant 0 : index
    %122 = vector.load %arg11[%c24_76, %c0_77] : memref<72x256xf32, #tpu.memory_space<vmem>>, vector<8x256xf32>
    tpu.vector_store %arg11[%c24_76, %c0_77], %121 {strides = array<i32>} : memref<72x256xf32, #tpu.memory_space<vmem>>, vector<8x256xf32>,
    %c0_78 = arith.constant 0 : index
    %c128_79 = arith.constant 128 : index
    %123 = vector.load %arg10[%c0_78, %c128_79] : memref<8x512xf32, #tpu.memory_space<vmem>>, vector<8x256xf32>
    %c32_80 = arith.constant 32 : index
    %c0_81 = arith.constant 0 : index
    %124 = vector.load %arg11[%c32_80, %c0_81] : memref<72x256xf32, #tpu.memory_space<vmem>>, vector<8x256xf32>
    tpu.vector_store %arg11[%c32_80, %c0_81], %123 {strides = array<i32>} : memref<72x256xf32, #tpu.memory_space<vmem>>, vector<8x256xf32>,
    %c0_82 = arith.constant 0 : index
    %c129_83 = arith.constant 129 : index
    %125 = vector.load %arg10[%c0_82, %c129_83] : memref<8x512xf32, #tpu.memory_space<vmem>>, vector<8x256xf32>
    %cst_84 = arith.constant 0.000000e+00 : f32
    %126 = vector.shape_cast %102 : vector<1x256xi1> to vector<1x256xi1>
    %127 = vector.broadcast %126 : vector<1x256xi1> to vector<8x256xi1>
    %128 = vector.broadcast %cst_84 : f32 to vector<8x256xf32>
    %129 = arith.select %127, %125, %128 : vector<8x256xi1>, vector<8x256xf32>
    %c40 = arith.constant 40 : index
    %c0_85 = arith.constant 0 : index
    %130 = vector.load %arg11[%c40, %c0_85] : memref<72x256xf32, #tpu.memory_space<vmem>>, vector<8x256xf32>
    tpu.vector_store %arg11[%c40, %c0_85], %129 {strides = array<i32>} : memref<72x256xf32, #tpu.memory_space<vmem>>, vector<8x256xf32>,
    %c0_86 = arith.constant 0 : index
    %c143_87 = arith.constant 143 : index
    %131 = vector.load %arg10[%c0_86, %c143_87] : memref<8x512xf32, #tpu.memory_space<vmem>>, vector<8x256xf32>
    %cst_88 = arith.constant 0.000000e+00 : f32
    %132 = vector.shape_cast %100 : vector<1x256xi1> to vector<1x256xi1>
    %133 = vector.broadcast %132 : vector<1x256xi1> to vector<8x256xi1>
    %134 = vector.broadcast %cst_88 : f32 to vector<8x256xf32>
    %135 = arith.select %133, %131, %134 : vector<8x256xi1>, vector<8x256xf32>
    %c48 = arith.constant 48 : index
    %c0_89 = arith.constant 0 : index
    %136 = vector.load %arg11[%c48, %c0_89] : memref<72x256xf32, #tpu.memory_space<vmem>>, vector<8x256xf32>
    tpu.vector_store %arg11[%c48, %c0_89], %135 {strides = array<i32>} : memref<72x256xf32, #tpu.memory_space<vmem>>, vector<8x256xf32>,
    %c0_90 = arith.constant 0 : index
    %c144_91 = arith.constant 144 : index
    %137 = vector.load %arg10[%c0_90, %c144_91] : memref<8x512xf32, #tpu.memory_space<vmem>>, vector<8x256xf32>
    %c56 = arith.constant 56 : index
    %c0_92 = arith.constant 0 : index
    %138 = vector.load %arg11[%c56, %c0_92] : memref<72x256xf32, #tpu.memory_space<vmem>>, vector<8x256xf32>
    tpu.vector_store %arg11[%c56, %c0_92], %137 {strides = array<i32>} : memref<72x256xf32, #tpu.memory_space<vmem>>, vector<8x256xf32>,
    %c0_93 = arith.constant 0 : index
    %c145_94 = arith.constant 145 : index
    %139 = vector.load %arg10[%c0_93, %c145_94] : memref<8x512xf32, #tpu.memory_space<vmem>>, vector<8x256xf32>
    %cst_95 = arith.constant 0.000000e+00 : f32
    %140 = vector.shape_cast %102 : vector<1x256xi1> to vector<1x256xi1>
    %141 = vector.broadcast %140 : vector<1x256xi1> to vector<8x256xi1>
    %142 = vector.broadcast %cst_95 : f32 to vector<8x256xf32>
    %143 = arith.select %141, %139, %142 : vector<8x256xi1>, vector<8x256xf32>
    %c64 = arith.constant 64 : index
    %c0_96 = arith.constant 0 : index
    %144 = vector.load %arg11[%c64, %c0_96] : memref<72x256xf32, #tpu.memory_space<vmem>>, vector<8x256xf32>
    tpu.vector_store %arg11[%c64, %c0_96], %143 {strides = array<i32>} : memref<72x256xf32, #tpu.memory_space<vmem>>, vector<8x256xf32>,
    %c0_97 = arith.constant 0 : index
    %c0_98 = arith.constant 0 : index
    %145 = vector.load %arg4[%c0_97, %c0_98] : memref<8x72xf32, #tpu.memory_space<vmem>>, vector<8x72xf32>
    %c0_99 = arith.constant 0 : index
    %c0_100 = arith.constant 0 : index
    %146 = vector.load %arg11[%c0_99, %c0_100] : memref<72x256xf32, #tpu.memory_space<vmem>>, vector<72x256xf32>
    %cst_101 = arith.constant dense<0.000000e+00> : vector<8x256xf32>
    %147 = tpu.matmul %145, %146, %cst_101 {dimension_numbers = #tpu.dot_dimension_numbers<[1], [0], [0], [1], [0, 0, 1, 1], [], []>} : vector<8x72xf32>, vector<72x256xf32>, vector<8x256xf32> -> vector<8x256xf32>
    %c0_102 = arith.constant 0 : index
    %c0_103 = arith.constant 0 : index
    %148 = vector.load %arg5[%c0_102, %c0_103] : memref<8x1xf32, #tpu.memory_space<vmem>>, vector<8x1xf32>
    %149 = vector.broadcast %148 : vector<8x1xf32> to vector<8x256xf32>
    %150 = arith.addf %147, %149 : vector<8x256xf32>
    %cst_104 = arith.constant 0.000000e+00 : f32
    %151 = vector.broadcast %cst_104 : f32 to vector<8x256xf32>
    %152 = arith.maximumf %150, %151 : vector<8x256xf32>
    %c0_105 = arith.constant 0 : index
    %c0_106 = arith.constant 0 : index
    %c0_107 = arith.constant 0 : index
    %153 = vector.load %arg7[%c0_105, %c0_106, %c0_107] : memref<1x8x256xf32, #tpu.memory_space<vmem>>, vector<1x8x256xf32>
    %154 = vector.shape_cast %153 : vector<1x8x256xf32> to vector<8x256xf32>
    %155 = vector.shape_cast %152 : vector<8x256xf32> to vector<1x8x256xf32>
    tpu.vector_store %arg7[%c0_105, %c0_106, %c0_107], %155 {strides = array<i32>} : memref<1x8x256xf32, #tpu.memory_space<vmem>>, vector<1x8x256xf32>,
    return
  }
  func.func @transform_0(%arg0: i32) -> (i32, i32, i32) {
    %c0_i32 = arith.constant 0 : i32
    %c0_i32_0 = arith.constant 0 : i32
    %c0_i32_1 = arith.constant 0 : i32
    return %arg0, %c0_i32, %c0_i32_0 : i32, i32, i32
  }
  func.func @transform_1(%arg0: i32) -> (i32, i32) {
    %c0_i32 = arith.constant 0 : i32
    %c0_i32_0 = arith.constant 0 : i32
    %c0_i32_1 = arith.constant 0 : i32
    return %c0_i32, %c0_i32_0 : i32, i32
  }
  func.func @transform_2(%arg0: i32) -> (i32, i32) {
    %c0_i32 = arith.constant 0 : i32
    %c0_i32_0 = arith.constant 0 : i32
    %c0_i32_1 = arith.constant 0 : i32
    return %c0_i32, %c0_i32_0 : i32, i32
  }
  func.func @transform_3(%arg0: i32) -> (i32, i32) {
    %c0_i32 = arith.constant 0 : i32
    %c0_i32_0 = arith.constant 0 : i32
    %c0_i32_1 = arith.constant 0 : i32
    return %c0_i32, %c0_i32_0 : i32, i32
  }
  func.func @transform_4(%arg0: i32) -> (i32, i32) {
    %c0_i32 = arith.constant 0 : i32
    %c0_i32_0 = arith.constant 0 : i32
    %c0_i32_1 = arith.constant 0 : i32
    return %c0_i32, %c0_i32_0 : i32, i32
  }
  func.func @transform_5(%arg0: i32) -> (i32, i32, i32) {
    %c0_i32 = arith.constant 0 : i32
    %c0_i32_0 = arith.constant 0 : i32
    %c0_i32_1 = arith.constant 0 : i32
    return %arg0, %c0_i32, %c0_i32_0 : i32, i32, i32
  }
  func.func @transform_6(%arg0: i32) -> (i32, i32, i32) {
    %c0_i32 = arith.constant 0 : i32
    %c0_i32_0 = arith.constant 0 : i32
    %c0_i32_1 = arith.constant 0 : i32
    return %arg0, %c0_i32, %c0_i32_0 : i32, i32, i32
  }
}

</mosaic_0001>

<bundles_post_ra>
// kernel: feature_extractor_forward.1
= control target key start
LH: loop header
LB: loop body
LE: loop exit
PB: predicated region body
PF: predicated region fallthrough
CT: control target
= control target key end

     0   :  { %s1125_s21 = smov 0   ;;  %s1344_s0 = inlined_call_operand.vmem [shape: f32[2,4,256], index: 0, kind: input, shape index: {}]   ;;  %s1345_s1 = inlined_call_operand.vmem [shape: f32[8,36], index: 1, kind: input, shape index: {}]   ;;  %s1346_s2 = inlined_call_operand.vmem [shape: f32[8,1], index: 2, kind: input, shape index: {}]   ;;  %s1347_s3 = inlined_call_operand.vmem [shape: f32[8,72], index: 3, kind: input, shape index: {}]   ;;  %s1348_s4 = inlined_call_operand.vmem [shape: f32[8,1], index: 4, kind: input, shape index: {}]   ;;  %s1349_s5 = inlined_call_operand.vmem [shape: f32[2,8,256], index: 5, kind: output, shape index: {0}]   ;;  %s1350_s6 = inlined_call_operand.vmem [shape: f32[2,8,256], index: 6, kind: output, shape index: {1}]  }
   0x1 LB: > { %s945_s22 = sadd.s32 4294967295, %s1077_s21   ;;  %p949_p0 = scmp.ge.s32.totalorder %s1077_s21, 1  ;;  %s1077_s21 = sphi %s1125_s21, %s17_s21  }
   0x2   : > { %p215_p1 = scmp.lt.s32.totalorder %s1077_s21, 3 }
   0x4   : > { %p216_p2 = pnand %p949_p0, %p215_p1 }
   0x5   : > { %p250_p3 = scmp.lt.s32.totalorder (!%p216_p2), %s945_s22, 1  ;;  %v1079_v0 = vmov (!%p216_p2), 0.0   ;;  %s1080_s27 = smov (!%p216_p2), 1   ;;  %v1088_v15 = vmov (!%p216_p2), 0   ;;  %v495_v16 = vld [vmem:[%s1346_s2] sm:$0xff] (!%p216_p2)  ;;  %v269_v17 = vlaneseq (!%p216_p2)  ;;  %vm315_vm0 = vcmask (!%p216_p2), 138240  }
   0x6   : > { %219 = sbr.rel (%p216_p2) target bundleno = 776 (0x308), region = 40  ;;  %266 = vst [vmem:[#allocation2] sm:$0xff] (!%p216_p2), %v1079_v0  ;;  %267 = vst [vmem:[#allocation2 + $0x8] sm:$0xff] (!%p216_p2), %v1079_v0  ;;  %576 = vmatprep.mubr.f32.mxu0 (!%p216_p2), %v1079_v0  ;;  %846 = vmatprep.mubr.f32.mxu1 (!%p216_p2), %v1079_v0  ;;  %s1081_s28 = smov (!%p216_p2), 17   ;;  %vm358_vm3 = vcmask (!%p216_p2), 121856   ;;  %vm378_vm5 = vcmask (!%p216_p2), 7168  }
   0x7   : > { %s1082_s29 = smov (!%p216_p2), 15   ;;  %s1083_s30 = smov (!%p216_p2), 16   ;;  %1028 = vset.pattern.permute.xlu0 (!%p216_p2), %v1088_v15  ;;  %1064 = vset.pattern.permute.xlu1 (!%p216_p2), %v1088_v15  ;;  %v270_v18 = vand.u32 (!%p216_p2), 127, %v269_v17  ;;  %vm336_vm6 = vcmask (!%p216_p2), 130048   ;;  %vm410_vm8 = vcmask (!%p216_p2), 1039360   ;;  %vm436_vm9 = vcmask (!%p216_p2), 924672  }
   0x8   : > { %s1084_s7 = smov (!%p216_p2), 127   ;;  %s1085_s8 = smov (!%p216_p2), 113   ;;  %vm457_vm10 = vcmask (!%p216_p2), 916480   ;;  %vm475_vm11 = vcmask (!%p216_p2), 908288   ;;  %vm505_vm12 = vcmask (!%p216_p2), 1043456   ;;  %vm501_vm13 = vcmask (!%p216_p2), 293888  }
   0x9   : > { %s1086_s9 = smov (!%p216_p2), 112   ;;  %s1087_s10 = smov (!%p216_p2), 111   ;;  %v271_v19 = vadd.s32 (!%p216_p2), 128, %v270_v18  ;;  %v276_v22 = vand.u32 (!%p216_p2), 15, %v270_v18  ;;  %vm1089_vm14 = vmmov (!%p216_p2), 1  }
   0xb   : > { %v283_v23 = vand.u32 (!%p216_p2), 15, %v271_v19  ;;  %vm1178_vm1 = vcmp.ge.s32.totalorder (!%p216_p2), %v276_v22, 1  ;;  %vm1206_vm7 = vcmp.lt.s32.totalorder (!%p216_p2), %v276_v22, 15 }
   0xd   : > { %s1364_s22 = smov (!%p250_p3, %s945_s22), 1  ;;  %v400_v10 = vld [vmem:[#allocation2 + $0xc] sm:$0xf]  ;;  %vm1182_vm2 = vcmp.ge.s32.totalorder %v283_v23, 1  ;;  %vm1192_vm4 = vcmp.lt.s32.totalorder %v283_v23, 15 }
   0xe   : > { %s962_s23 = sshll.u32 %s1364_s22, 3  ;;  %v426_v11 = vld [vmem:[#allocation2 + $0xc] sm:$0xf]  ;;  %s963_s15 = sshll.u32 %s1364_s22, 4  ;;  %vm1280_vm15 = vmpackc.low %vm1089_vm14, %vm1182_vm2 }
   0xf   : > { %s254_s26 = scalar_lea.vmem %s1344_s0, %s962_s23  ;;  %v1070_v12 = vld [vmem:[#allocation2 + $0xc] ss:$0 sps:$4 sm:$0xff]   ;;  %s259_s18 = scalar_lea.vmem %s1349_s5, %s963_s15 }
  0x10   : > { %v265_v1 = vld [vmem:[%s254_s26] sm:$0xff]  ;;  %v465_v14 = vld [vmem:[#allocation2 + $0xc] sm:$0xf] }
  0x11   : > { %268 = vst [vmem:[#allocation2 + $0x4] sm:$0xff] %v265_v1  ;;  %v403_v2 = vcombine.high %v265_v1, %v265_v1  ;;  %397 = vst [vmem:[#allocation3 + $0x20] sm:$0xf] %v265_v1  ;;  %v449_v13 = vcombine.low %v265_v1, %v265_v1 }
  0x13   : > { %398 = vst [vmem:[#allocation3 + $0x28] sm:$0xf] %v403_v2 }
  0x18   : > { %v368_v3 = vld [vmem:[#allocation2 + $0x8] sm:$0xf]  ;;  %v367_v4 = vld [vmem:[#allocation2] sm:$0xff] }
  0x19   : > { %376 = vrot.lane.b32.xlu0 %v368_v3, %s1080_s27  ;;  %372 = vrot.lane.b32.xlu1 %v367_v4, %s1080_s27  ;;  %v301_v5 = vld [vmem:[#allocation2 + $0x8] sm:$0xf]  ;;  %v371_v6 = vcombine.high %v367_v4, %v367_v4  ;;  %v328_v9 = vcombine.low %v367_v4, %v367_v4 }
  0x1a   : > { %v344_v7 = vld [vmem:[#allocation2 + $0x8] sm:$0xf] }
  0x1b   : > { %v1067_v8 = vld [vmem:[#allocation2 + $0x8] ss:$0 sps:$4 sm:$0xff]  }
  0x1d   : > { %313 = vrot.lane.b32.xlu0 %v301_v5, %s1081_s28  ;;  %309 = vrot.lane.b32.xlu1 %v367_v4, %s1081_s28 }
  0x21   : > { %356 = vrot.lane.b32.xlu0 %v344_v7, %s1082_s29  ;;  %311 = vrot.lane.b32.xlu1 %v371_v6, %s1081_s28 }
  0x25   : > { %332 = vrot.lane.b32.xlu0 %v367_v4, %s1083_s30  ;;  %354 = vrot.lane.b32.xlu1 %v371_v6, %s1082_s29 }
  0x29   : > { %374 = vrot.lane.b32.xlu0 %v371_v6, %s1080_s27  ;;  %334 = vrot.lane.b32.xlu1 %v1067_v8, %s1083_s30 }
  0x2d   : > { %352 = vrot.lane.b32.xlu0 %v367_v4, %s1082_s29  ;;  %330 = vrot.lane.b32.xlu1 %v328_v9, %s1083_s30 }
  0x31   : > { %406 = vrot.lane.b32.xlu0 %v403_v2, %s1084_s7  ;;  %408 = vrot.lane.b32.xlu1 %v400_v10, %s1084_s7 }
  0x35   : > { %404 = vrot.lane.b32.xlu0 %v265_v1, %s1084_s7  ;;  %432 = vrot.lane.b32.xlu1 %v403_v2, %s1085_s8 }
  0x39   : > { %434 = vrot.lane.b32.xlu0 %v426_v11, %s1085_s8  ;;  %430 = vrot.lane.b32.xlu1 %v265_v1, %s1085_s8 }
  0x3d   : > { %453 = vrot.lane.b32.xlu0 %v265_v1, %s1086_s9  ;;  %455 = vrot.lane.b32.xlu1 %v1070_v12, %s1086_s9 }
  0x41   : > { %451 = vrot.lane.b32.xlu0 %v449_v13, %s1086_s9  ;;  %471 = vrot.lane.b32.xlu1 %v403_v2, %s1087_s10 }
  0x45   : > { %473 = vrot.lane.b32.xlu0 %v465_v14, %s1087_s10  ;;  %469 = vrot.lane.b32.xlu1 %v265_v1, %s1087_s10 }
  0x49   : > { %498 = vperm.xlu0 %1028, %v495_v16   ;;  %619 = vrot.lane.b32.xlu1 %v1079_v0, %s1083_s30 }
  0x4d   : > { %599 = vrot.lane.b32.xlu0 %v1079_v0, %s1081_s28  ;;  %657 = vrot.lane.b32.xlu1 %v1079_v0, %s1080_s27 }
  0x51   : > { %637 = vrot.lane.b32.xlu0 %v1079_v0, %s1082_s29 }
  0x8b   : > { %v377_v20 = vpop.permute.xlu0 %376  ;;  %v373_v21 = vpop.permute.xlu1 %372 }
  0x8f   : > { %v314_v24 = vpop.permute.xlu0 %313  ;;  %v310_v25 = vpop.permute.xlu1 %309 }
  0x93   : > { %v357_v28 = vpop.permute.xlu0 %356  ;;  %v312_v29 = vpop.permute.xlu1 %311 }
  0x94   : > { %v316_v30 = vsel %vm315_vm0, %v310_v25, %v312_v29  ;;  %v317_v31 = vsel %vm315_vm0, %v312_v29, %v314_v24 }
  0x95   : > { %v320_v32 = vsel %vm1178_vm1, %v316_v30, 0.0  ;;  %v321_v33 = vsel %vm1182_vm2, %v317_v31, 0.0 }
  0x96   : > { %322 = vst [vmem:[#allocation3] sm:$0xf] %v320_v32  ;;  %323 = vst [vmem:[#allocation3 + $0x8] sm:$0xf] %v321_v33 }
  0x97   : > { %v333_v35 = vpop.permute.xlu0 %332  ;;  %v355_v36 = vpop.permute.xlu1 %354 }
  0x98   : > { %v360_v37 = vsel %vm358_vm3, %v355_v36, %v357_v28 }
  0x99   : > { %v364_v38 = vsel %vm1192_vm4, %v360_v37, 0.0 }
  0x9a   : > { %366 = vst [vmem:[#allocation3 + $0x18] sm:$0xf] %v364_v38 }
  0x9b   : > { %v375_v39 = vpop.permute.xlu0 %374  ;;  %v335_v40 = vpop.permute.xlu1 %334 }
  0x9c   : > { %v379_v41 = vsel %vm378_vm5, %v373_v21, %v375_v39  ;;  %v380_v42 = vsel %vm378_vm5, %v375_v39, %v377_v20  ;;  %v338_v43 = vsel %vm336_vm6, %v333_v35, %v335_v40 }
  0x9d   : > { %v383_v44 = vsel %vm1178_vm1, %v379_v41, 0.0  ;;  %v384_v45 = vsel %vm1182_vm2, %v380_v42, 0.0  ;;  %342 = vst [vmem:[#allocation3 + $0x8] sm:$0xf0] %v338_v43 }
  0x9e   : > { %v387_v46 = vrot.slane %v383_v44, 4  ;;  %v388_v47 = vrot.slane %v384_v45, 4 }
  0x9f   : > { %v353_v49 = vpop.permute.xlu0 %352  ;;  %v331_v50 = vpop.permute.xlu1 %330 }
  0xa0   : > { %391 = vst [vmem:[#allocation3 + $0x10] sm:$0xf0] %v387_v46  ;;  %392 = vst [vmem:[#allocation3 + $0x18] sm:$0xf0] %v388_v47  ;;  %v359_v51 = vsel %vm358_vm3, %v353_v49, %v355_v36  ;;  %v337_v52 = vsel %vm336_vm6, %v331_v50, %v333_v35  ;;  %v484_v36 = vld [vmem:[%s1345_s1] sm:$0xff] }
  0xa1   : > { %v363_v53 = vsel %vm1206_vm7, %v359_v51, 0.0  ;;  %341 = vst [vmem:[#allocation3] sm:$0xf0] %v337_v52  ;;  %v772_v46 = vld [vmem:[%s1348_s4] sm:$0xff] }
  0xa2   : > { %365 = vst [vmem:[#allocation3 + $0x10] sm:$0xf] %v363_v53 }
  0xa3   : > { %v407_v54 = vpop.permute.xlu0 %406  ;;  %v409_v55 = vpop.permute.xlu1 %408 }
  0xa4   : > { %v412_v56 = vsel %vm410_vm8, %v407_v54, %v409_v55  ;;  %v486_v61 = vld [vmem:[#allocation3 + $0x8] sm:$0xff] }
  0xa5   : > { %v416_v57 = vsel %vm1192_vm4, %v412_v56, 0.0 }
  0xa6   : > { %v420_v58 = vrot.slane %v416_v57, 4 }
  0xa7   : > { %v405_v59 = vpop.permute.xlu0 %404  ;;  %v433_v60 = vpop.permute.xlu1 %432  ;;  %v488_v62 = vld [vmem:[#allocation3 + $0x18] sm:$0xff] }
  0xa8   : > { %424 = vst [vmem:[#allocation3 + $0x28] sm:$0xf0] %v420_v58  ;;  %v411_v63 = vsel %vm410_vm8, %v405_v59, %v407_v54  ;;  %v977_v1 = vpack.c.bf16 %v488_v62, %v486_v61  ;;  %v485_v2 = vld [vmem:[#allocation3] sm:$0xff] }
  0xa9   : > { %v415_v3 = vsel %vm1206_vm7, %v411_v63, 0.0  ;;  %v487_v4 = vld [vmem:[#allocation3 + $0x10] sm:$0xff] }
  0xaa   : > { %v419_v5 = vrot.slane %v415_v3, 4  ;;  %978 = vmatprep.subr.bf16.mxu0 %v977_v1  ;;  %v979_v6 = vpack.c.bf16 %v487_v4, %v485_v2 }
  0xab   : > { %v435_v7 = vpop.permute.xlu0 %434  ;;  %v431_v8 = vpop.permute.xlu1 %430 }
  0xac   : > { %423 = vst [vmem:[#allocation3 + $0x20] sm:$0xf0] %v419_v5  ;;  %v438_v9 = vsel %vm436_vm9, %v433_v60, %v435_v7  ;;  %v437_v10 = vsel %vm436_vm9, %v431_v8, %v433_v60  ;;  %980 = vmatpush1.bf16.msra.mxu0 %v979_v6 }
  0xad   : > { %v442_v11 = vsel %vm1182_vm2, %v438_v9, 0.0  ;;  %v441_v12 = vsel %vm1178_vm1, %v437_v10, 0.0 }
  0xae   : > { %444 = vst [vmem:[#allocation3 + $0x38] sm:$0xf] %v442_v11  ;;  %443 = vst [vmem:[#allocation3 + $0x30] sm:$0xf] %v441_v12 }
  0xaf   : > { %v454_v13 = vpop.permute.xlu0 %453  ;;  %v456_v14 = vpop.permute.xlu1 %455  ;;  %v490_v23 = vld [vmem:[#allocation3 + $0x28] sm:$0xff] }
  0xb0   : > { %v459_v15 = vsel %vm457_vm10, %v454_v13, %v456_v14 }
  0xb1   : > { %463 = vst [vmem:[#allocation3 + $0x38] sm:$0xf0] %v459_v15 }
  0xb3   : > { %v452_v16 = vpop.permute.xlu0 %451  ;;  %v472_v17 = vpop.permute.xlu1 %471  ;;  %v489_v30 = vld [vmem:[#allocation3 + $0x20] sm:$0xff] }
  0xb4   : > { %v458_v18 = vsel %vm457_vm10, %v452_v16, %v454_v13 }
  0xb5   : > { %462 = vst [vmem:[#allocation3 + $0x30] sm:$0xf0] %v458_v18 }
  0xb7   : > { %v474_v19 = vpop.permute.xlu0 %473  ;;  %v470_v20 = vpop.permute.xlu1 %469 }
  0xb8   : > { %v477_v21 = vsel %vm475_vm11, %v472_v17, %v474_v19  ;;  %v476_v22 = vsel %vm475_vm11, %v470_v20, %v472_v17  ;;  %v492_v24 = vld [vmem:[#allocation3 + $0x38] sm:$0xff] }
  0xb9   : > { %v481_v25 = vsel %vm1192_vm4, %v477_v21, 0.0  ;;  %v480_v28 = vsel %vm1206_vm7, %v476_v22, 0.0  ;;  %v981_v29 = vpack.c.bf16 %v492_v24, %v490_v23 }
  0xba   : > { %483 = vst [vmem:[#allocation3 + $0x48] sm:$0xf] %v481_v25  ;;  %482 = vst [vmem:[#allocation3 + $0x40] sm:$0xf] %v480_v28 }
  0xbb   : > { %982 = vmatprep.subr.bf16.mxu0 %v981_v29  ;;  %v620_v49 = vpop.permute.xlu1 %619 }
  0xbc   : > { %v491_v31 = vld [vmem:[#allocation3 + $0x30] sm:$0xff] }
  0xbd   : > { %v983_v32 = vpack.c.bf16 %v491_v31, %v489_v30 }
  0xbf   : > { %984 = vmatpush1.bf16.msra.mxu0 %v983_v32  ;;  %v658_v51 = vpop.permute.xlu1 %657 }
  0xc1   : > { %v494_v33 = vld [vmem:[#allocation3 + $0x48] sm:$0xf]  ;;  %v493_v35 = vld [vmem:[#allocation3 + $0x40] sm:$0xf] }
  0xc2   : > { %956 = vmatprep.subr.msk.mxu0 %vm505_vm12, %v494_v33 }
  0xc3   : > { %957 = vmatpush1.msk.msra.mxu0 %vm505_vm12, %v493_v35  ;;  %vm1289_vm12 = vmpackc.low %vm1089_vm14, %vm1178_vm1 }
  0xc4   : > { %958 = vmatmul.mubr.msk.f32.vlgmr.msra.gmra.mrb[0].mxu0 %vm501_vm13, %v484_v36 }
  0xc8   : > { %v499_v37 = vpop.permute.xlu0 %498 }
  0xcc   : > { %v600_v47 = vpop.permute.xlu0 %599 }
  0xd0   : > { %v638_v50 = vpop.permute.xlu0 %637 }
 0x197   : > { %v578_v38 = vpop.f32.mrb[0].mxu0 }
 0x198   : > { %v579_v39 = vadd.f32 %v578_v38, %v499_v37  ;;  %v580_v40 = vpop.f32.mrb[1].mxu0 }
 0x199   : > { %v581_v41 = vadd.f32 %v580_v40, %v499_v37 }
 0x19a   : > { %v1243_v42 = vmax.f32 %v579_v39, 0.0 }
 0x19b   : > { %v1245_v43 = vmax.f32 %v581_v41, 0.0  ;;  %v753_v41 = vld [vmem:[%s1347_s3] sm:$0xff] }
 0x19c   : > { %585 = vst [vmem:[%s259_s18] sm:$0xff] %v1243_v42 }
 0x19d   : > { %v1039_v44 = vpack.i.bf16 %v1245_v43, %v1243_v42  ;;  %586 = vst [vmem:[%s259_s18 + $0x8] sm:$0xff] %v1245_v43  ;;  %v1049_v45 = vpack.i.bf16 %v1079_v0, %v1245_v43 }
 0x19f   : > { %1040 = vrot.lane.b32.xlu0 %v1039_v44, %s1082_s29  ;;  %1030 = vrot.lane.b32.xlu1 %v1039_v44, %s1081_s28 }
 0x1a3   : > { %701 = vrot.lane.b32.xlu0 %v1243_v42, %s1085_s8  ;;  %1035 = vrot.lane.b32.xlu1 %v1039_v44, %s1083_s30 }
 0x1a7   : > { %1050 = vrot.lane.b32.xlu0 %v1049_v45, %s1084_s7  ;;  %1045 = vrot.lane.b32.xlu1 %v1039_v44, %s1080_s27  ;;  %s264_s27 = scalar_lea.vmem %s1350_s6, %s963_s15 }
 0x1ab   : > { %1055 = vrot.lane.b32.xlu0 %v1049_v45, %s1085_s8  ;;  %681 = vrot.lane.b32.xlu1 %v1243_v42, %s1084_s7 }
 0x1af   : > { %741 = vrot.lane.b32.xlu0 %v1245_v43, %s1087_s10  ;;  %1060 = vrot.lane.b32.xlu1 %v1049_v45, %s1086_s9 }
 0x1b3   : > { %739 = vrot.lane.b32.xlu0 %v1243_v42, %s1087_s10  ;;  %721 = vrot.lane.b32.xlu1 %v1243_v42, %s1086_s9 }
 0x1b7   : > { %743 = vrot.lane.b32.xlu1 %v1079_v0, %s1087_s10 }
 0x1bb   : > { %775 = vperm.xlu1 %1064, %v772_v46  }
 0x211   : > { %v1041_v52 = vpop.permute.xlu0 %1040  ;;  %v1031_v53 = vpop.permute.xlu1 %1030 }
 0x212   : > { %v1033_v54 = vunpack.i.h.bf16 %v1031_v53  ;;  %v1032_v55 = vunpack.i.l.bf16 %v1031_v53  ;;  %v1043_v60 = vunpack.i.h.bf16 %v1041_v52  ;;  %v1042_v61 = vunpack.i.l.bf16 %v1041_v52 }
 0x214   : > { %v606_v0 = vsel %vm315_vm0, %v1032_v55, %v1033_v54  ;;  %v605_v1 = vsel %vm315_vm0, %v600_v47, %v1032_v55  ;;  %v643_v12 = vsel %vm358_vm3, %v638_v50, %v1042_v61  ;;  %v644_v13 = vsel %vm358_vm3, %v1042_v61, %v1043_v60  ;;  %vm992_vm0 = vmpackc.low %vm1182_vm2, %vm1192_vm4 }
 0x215   : > { %v702_v56 = vpop.permute.xlu0 %701  ;;  %v1036_v57 = vpop.permute.xlu1 %1035  ;;  %vm995_vm3 = vmpackc.low %vm1178_vm1, %vm1206_vm7  ;;  %vm778_vm1 = vcmask 588800  }
 0x216   : > { %v1038_v58 = vunpack.i.h.bf16 %v1036_v57  ;;  %v1037_v59 = vunpack.i.l.bf16 %v1036_v57  ;;  %vm1001_vm2 = vmpackc.low %vm1206_vm7, %vm1089_vm14 }
 0x218   : > { %v626_v62 = vsel %vm336_vm6, %v1037_v59, %v1038_v58  ;;  %v625_v2 = vsel %vm336_vm6, %v620_v49, %v1037_v59 }
 0x219   : > { %v1051_v3 = vpop.permute.xlu0 %1050  ;;  %v1046_v4 = vpop.permute.xlu1 %1045  ;;  %v985_v5 = vpack.c.bf16 %v626_v62, %v606_v0  ;;  %v988_v6 = vpack.c.bf16 %v625_v2, %v605_v1 }
 0x21a   : > { %v1053_v8 = vunpack.i.h.bf16 %v1051_v3  ;;  %v1052_v9 = vunpack.i.l.bf16 %v1051_v3  ;;  %v1048_v10 = vunpack.i.h.bf16 %v1046_v4  ;;  %v1047_v11 = vunpack.i.l.bf16 %v1046_v4 }
 0x21b   : > { %987 = vmatprep.subr.msk.bf16.mxu1 %vm1280_vm15, %v985_v5 }
 0x21c   : > { %v688_v14 = vsel %vm410_vm8, %v1052_v9, %v1053_v8  ;;  %v663_v15 = vsel %vm378_vm5, %v658_v51, %v1047_v11  ;;  %v664_v16 = vsel %vm378_vm5, %v1047_v11, %v1048_v10  ;;  %990 = vmatpush1.bf16.msk.msra.mxu1 %vm1289_vm12, %v988_v6  ;;  %vm998_vm5 = vmpackc.low %vm1192_vm4, %vm1089_vm14 }
 0x21d   : > { %v991_v17 = vpack.c.bf16 %v664_v16, %v644_v13  ;;  %v994_v18 = vpack.c.bf16 %v663_v15, %v643_v12  ;;  %v1056_v19 = vpop.permute.xlu0 %1055  ;;  %v682_v20 = vpop.permute.xlu1 %681  ;;  %v997_v21 = vpack.c.bf16 %v688_v14, %v1245_v43 }
 0x21e   : > { %v687_v22 = vsel %vm410_vm8, %v682_v20, %v1052_v9  ;;  %v1058_v27 = vunpack.i.h.bf16 %v1056_v19  ;;  %v1057_v23 = vunpack.i.l.bf16 %v1056_v19 }
 0x21f   : > { %993 = vmatprep.subr.msk.bf16.mxu1 %vm992_vm0, %v991_v17  ;;  %v1000_v26 = vpack.c.bf16 %v687_v22, %v1243_v42 }
 0x220   : > { %996 = vmatpush1.bf16.msk.msra.mxu1 %vm995_vm3, %v994_v18  ;;  %v708_v30 = vsel %vm436_vm9, %v1057_v23, %v1058_v27  ;;  %v707_v35 = vsel %vm436_vm9, %v702_v56, %v1057_v23 }
 0x221   : > { %v1061_v24 = vpop.permute.xlu1 %1060  ;;  %999 = vmatprep.subr.msk.bf16.mxu1 %vm998_vm5, %v997_v21  ;;  %v742_v29 = vpop.permute.xlu0 %741 }
 0x222   : > { %v1063_v25 = vunpack.i.h.bf16 %v1061_v24  ;;  %v1062_v28 = vunpack.i.l.bf16 %v1061_v24 }
 0x224   : > { %v728_v31 = vsel %vm457_vm10, %v1062_v28, %v1063_v25  ;;  %1002 = vmatpush1.bf16.msk.msra.mxu1 %vm1001_vm2, %v1000_v26 }
 0x225   : > { %v1003_v32 = vpack.c.bf16 %v728_v31, %v708_v30  ;;  %v722_v33 = vpop.permute.xlu1 %721  ;;  %v740_v38 = vpop.permute.xlu0 %739 }
 0x226   : > { %v727_v36 = vsel %vm457_vm10, %v722_v33, %v1062_v28  ;;  %v745_v42 = vsel %vm475_vm11, %v740_v38, %v742_v29 }
 0x227   : > { %v1006_v37 = vpack.c.bf16 %v727_v36, %v707_v35  ;;  %1005 = vmatprep.subr.msk.bf16.mxu1 %vm1280_vm15, %v1003_v32 }
 0x229   : > { %v744_v39 = vpop.permute.xlu1 %743  ;;  %1008 = vmatpush1.bf16.msk.msra.mxu1 %vm1289_vm12, %v1006_v37 }
 0x22a   : > { %v746_v40 = vsel %vm475_vm11, %v742_v29, %v744_v39 }
 0x22b   : > { %975 = vmatprep.subr.msk.mxu1 %vm1192_vm4, %v746_v40 }
 0x22d   : > { %976 = vmatpush1.msk.msra.mxu1 %vm1206_vm7, %v745_v42 }
 0x22e   : > { %959 = vmatmul.mubr.msk.f32.vlgmr.msra.gmra.mrb[0].mxu1 %vm778_vm1, %v753_v41 }
 0x23a   : > { %v776_v43 = vpop.permute.xlu1 %775 }
 0x301   : > { %v848_v44 = vpop.f32.mrb[0].mxu1 }
 0x302   : > { %v849_v45 = vadd.f32 %v848_v44, %v776_v43  ;;  %v850_v46 = vpop.f32.mrb[1].mxu1 }
 0x303   : > { %v851_v34 = vadd.f32 %v850_v46, %v776_v43 }
 0x304   : > { %v853_v47 = vmax.f32 %v849_v45, 0.0 }
 0x305   : > { %v854_v49 = vmax.f32 %v851_v34, 0.0 }
 0x306   : > { %855 = vst [vmem:[%s264_s27] sm:$0xff] %v853_v47 }
 0x307   : > { %856 = vst [vmem:[%s264_s27 + $0x8] sm:$0xff] %v854_v49 }
 0x308 PF: > { %s17_s21 = sadd.s32 1, %s1077_s21  }
 0x309   : > { %p14_p4 = scmp.ge.s32.totalorder %s17_s21, 4  }
 0x30b   :  { %16 = sbr.rel (!%p14_p4) target bundleno = 1 (0x1), region = 82 }

</bundles_post_ra>
